<compile_context>
chip_gen: v7x
topology: tpu7x:2x2x1
jax: 0.10.0
libtpu: 0.0.40
codegen_flags: <defaults>
</compile_context>

<pallas_src>
import functools

import jax
import jax.numpy as jnp
from jax.experimental import pallas as pl
from jax.experimental.pallas import tpu as pltpu

_LANE = 128
_SUBLANE = 8  # f32 sublane tile; packed dtypes use 16 (16-bit) / 32 (8-bit)


def _round_up(x, m):
    return ((x + m - 1) // m) * m


def _pack_sublane(dtype):
    """Sublane multiple for clean row slicing of this dtype."""
    itemsize = jnp.dtype(dtype).itemsize
    return {1: 32, 2: 16}.get(itemsize, _SUBLANE)


def _combine_loss_kernel(t_ref, p_ref, acc_ref, *, rows_total, row_tile,
                         chunk_rows, steps_per_slice, needs_mask):
    """One grid step: accumulate sum((t-p)^2) and sum(|t-p|) onto (8,128) vregs.

    acc_ref is this slice's (1, 2, 8, 128) f32 output block; it stays resident
    across the inner ("arbitrary") grid axis because its index map ignores it.
    """
    c = pl.program_id(0)      # slice index ("parallel" -> per-TensorCore on v7x)
    step = pl.program_id(1)   # streaming step within the slice ("arbitrary")

    @pl.when(step == 0)
    def _():
        acc_ref[...] = jnp.zeros_like(acc_ref)

    # Row offset of this *logical* block in the (rows_total, 128) slab.  The
    # input index_map clamps out-of-range block indices (phantom blocks re-read
    # valid data), but the mask below uses the logical offset, so their
    # contribution is exactly zero.
    block_row0 = (c * steps_per_slice + step) * row_tile

    def partial_sums(r0, nrows):
        # Load one (nrows, 128) chunk of each input, upcast to f32, and fuse
        # both accumulations on the single small `diff` temporary.
        t = t_ref[pl.ds(r0, nrows), :].astype(jnp.float32)
        p = p_ref[pl.ds(r0, nrows), :].astype(jnp.float32)
        diff = t - p
        if needs_mask:
            row_in_tile = r0 + jax.lax.broadcasted_iota(jnp.int32, (nrows, 1), 0)
            valid = (block_row0 + row_in_tile) < rows_total
            diff = jnp.where(valid, diff, 0.0)
        d3 = diff.reshape(nrows // _SUBLANE, _SUBLANE, _LANE)
        # Reducing axis 0 is pure VPU adds across vregs (no XLU work here).
        return jnp.sum(d3 * d3, axis=0), jnp.sum(jnp.abs(d3), axis=0)

    n_full = row_tile // chunk_rows
    rem = row_tile - n_full * chunk_rows

    if n_full == 1 and rem == 0:
        sq, ab = partial_sums(0, row_tile)
    else:
        def body(ci, carry):
            sq_acc, ab_acc = carry
            r0 = pl.multiple_of(ci * chunk_rows, chunk_rows)
            dsq, dab = partial_sums(r0, chunk_rows)
            return sq_acc + dsq, ab_acc + dab

        zero = jnp.zeros((_SUBLANE, _LANE), jnp.float32)
        sq, ab = jax.lax.fori_loop(0, n_full, body, (zero, zero))
        if rem:
            dsq, dab = partial_sums(n_full * chunk_rows, rem)
            sq = sq + dsq
            ab = ab + dab

    acc_ref[0, 0] += sq   # squared-error partial sums (MSE)
    acc_ref[0, 1] += ab   # absolute-error partial sums (L1)


def combine_criterion(targets, preds, *, max_row_tile=4096, num_slices=2):
    """JAX equivalent of CombineCriterion([MSELoss(), L1Loss()])(targets, preds).

    Works for arbitrary (equal) input shapes and dtypes; returns
    [mse_loss, l1_loss] as scalar float32 values.
    """
    assert targets.shape == preds.shape, "targets/preds shape mismatch"
    n = int(targets.size)
    assert n > 0, "empty input"

    sub = max(_pack_sublane(targets.dtype), _pack_sublane(preds.dtype))

    # Flatten in native dtype (no f32 upcast in HBM). Reshape to a lane-dense
    # (rows, 128) slab; zero-pad only up to the next 128-lane row (and to one
    # packed sublane tile for tiny inputs). Both inputs get IDENTICAL zero
    # padding -> diff == 0 there, so the sums stay exact without masking.
    t_flat = jnp.ravel(targets)
    p_flat = jnp.ravel(preds)
    rows = max(pl.cdiv(n, _LANE), sub)
    padded_n = rows * _LANE
    if padded_n != n:
        t_flat = jnp.pad(t_flat, (0, padded_n - n))
        p_flat = jnp.pad(p_flat, (0, padded_n - n))
    t2 = t_flat.reshape(rows, _LANE)
    p2 = p_flat.reshape(rows, _LANE)

    # Tiling: 4096 rows x 128 lanes (2 MiB/buffer for f32) keeps the
    # double-buffered footprint (2 inputs x 2 buffers) at ~8 MiB -> safe on
    # v5e's 16 MiB default scoped VMEM; v6e/v7x can raise max_row_tile to 8192.
    num_slices = max(1, int(num_slices))
    max_row_tile = max(sub, (int(max_row_tile) // sub) * sub)
    row_tile = min(max_row_tile, _round_up(pl.cdiv(rows, num_slices), sub))
    chunk_rows = min(256, row_tile)          # 256 is a multiple of 8/16/32

    num_blocks = pl.cdiv(rows, row_tile)
    steps = pl.cdiv(num_blocks, num_slices)
    # Mask needed iff any logical block (incl. phantom blocks of the core
    # split) extends past the real row count.
    needs_mask = num_slices * steps * row_tile > rows

    kernel = functools.partial(
        _combine_loss_kernel,
        rows_total=rows,
        row_tile=row_tile,
        chunk_rows=chunk_rows,
        steps_per_slice=steps,
        needs_mask=needs_mask,
    )

    def in_map(c, i):
        # Clamp phantom block indices in-bounds; their data is masked to zero
        # inside the kernel via the logical row offset.
        return (jnp.minimum(c * steps + i, num_blocks - 1), 0)

    partials = pl.pallas_call(
        kernel,
        out_shape=jax.ShapeDtypeStruct((num_slices, 2, _SUBLANE, _LANE),
                                       jnp.float32),
        grid_spec=pltpu.PrefetchScalarGridSpec(
            num_scalar_prefetch=0,
            grid=(num_slices, steps),
            in_specs=[
                pl.BlockSpec((row_tile, _LANE), in_map),
                pl.BlockSpec((row_tile, _LANE), in_map),
            ],
            # Lane-dense per-slice accumulator, resident across the inner axis.
            out_specs=pl.BlockSpec((1, 2, _SUBLANE, _LANE),
                                   lambda c, i: (c, 0, 0, 0)),
        ),
        compiler_params=pltpu.CompilerParams(
            dimension_semantics=("parallel", "arbitrary"),
            vmem_limit_bytes=32 * 1024 * 1024,
        ),
    )(t2, p2)

    # Tiny epilogue in plain JAX: combine per-slice partials, reduce across
    # sublanes/lanes, scale by 1/n (true element count, not the padded one).
    sums = jnp.sum(partials, axis=(0, 2, 3))   # (2,) = [sum sq err, sum abs err]
    inv_n = jnp.float32(1.0 / n)
    return [sums[0] * inv_n, sums[1] * inv_n]


if __name__ == "__main__":
    key = jax.random.PRNGKey(0)
    k_t, k_p = jax.random.split(key)

    # Small NCHW-shaped inputs consistent with a typical criterion call.
    targets = jax.random.normal(k_t, (2, 4, 16, 16), dtype=jnp.float32)
    preds = jax.random.normal(k_p, (2, 4, 16, 16), dtype=jnp.float32)

    losses = combine_criterion(targets, preds)
    losses = [jax.block_until_ready(l) for l in losses]

    ref_mse = jnp.mean((targets - preds) ** 2)
    ref_l1 = jnp.mean(jnp.abs(targets - preds))
    assert jnp.allclose(losses[0], ref_mse, rtol=1e-5, atol=1e-6), (losses[0], ref_mse)
    assert jnp.allclose(losses[1], ref_l1, rtol=1e-5, atol=1e-6), (losses[1], ref_l1)

    # Non-128-divisible element count: exercises the tiny lane pad plus the
    # in-kernel ragged-tail mask.
    t2 = jax.random.normal(k_t, (3, 5, 7, 11), dtype=jnp.float32)
    p2 = jax.random.normal(k_p, (3, 5, 7, 11), dtype=jnp.float32)
    l2 = combine_criterion(t2, p2)
    l2 = [jax.block_until_ready(l) for l in l2]
    assert jnp.allclose(l2[0], jnp.mean((t2 - p2) ** 2), rtol=1e-5, atol=1e-6)
    assert jnp.allclose(l2[1], jnp.mean(jnp.abs(t2 - p2)), rtol=1e-5, atol=1e-6)

    # bf16 inputs stream in native dtype (kernel upcasts on load): exercises
    # the packed-sublane row tiling and a ragged last block.
    t3 = jax.random.normal(k_t, (2, 3, 24, 40), dtype=jnp.bfloat16)
    p3 = jax.random.normal(k_p, (2, 3, 24, 40), dtype=jnp.bfloat16)
    l3 = combine_criterion(t3, p3)
    l3 = [jax.block_until_ready(l) for l in l3]
    t3f, p3f = t3.astype(jnp.float32), p3.astype(jnp.float32)
    assert jnp.allclose(l3[0], jnp.mean((t3f - p3f) ** 2), rtol=1e-4, atol=1e-5)
    assert jnp.allclose(l3[1], jnp.mean(jnp.abs(t3f - p3f)), rtol=1e-4, atol=1e-5)

    print("KERNEL_OK")
</pallas_src>

<mosaic_0001>
module attributes {stable_mosaic.version = 11 : i64} {
  func.func @_combine_loss_kernel(%arg0: i32, %arg1: i32, %arg2: memref<8x128xf32, #tpu.memory_space<vmem>>, %arg3: memref<8x128xf32, #tpu.memory_space<vmem>>, %arg4: memref<1x2x8x128xf32, #tpu.memory_space<vmem>>) attributes {dimension_semantics = [#tpu.dimension_semantics<parallel>, #tpu.dimension_semantics<arbitrary>], iteration_bounds = array<i64: 2, 1>, scalar_prefetch = 0 : i64, scratch_operands = 0 : i64, tpu.core_type = #tpu.core_type<tc>, window_params = [{transform_indices = @transform_0, window_bounds = array<i64: 8, 128>}, {transform_indices = @transform_1, window_bounds = array<i64: 8, 128>}, {transform_indices = @transform_2, window_bounds = array<i64: 1, 2, 8, 128>}]} {
    %c0_i32 = arith.constant 0 : i32
    %0 = arith.cmpi eq, %arg1, %c0_i32 : i32
    %1 = arith.extui %0 : i1 to i32
    %c0_i32_0 = arith.constant 0 : i32
    %2 = arith.cmpi ne, %1, %c0_i32_0 : i32
    scf.if %2 {
      %cst_20 = arith.constant 0.000000e+00 : f32
      %23 = vector.broadcast %cst_20 : f32 to vector<1x2x8x128xf32>
      %c0_21 = arith.constant 0 : index
      %c0_22 = arith.constant 0 : index
      %c0_23 = arith.constant 0 : index
      %c0_24 = arith.constant 0 : index
      %24 = vector.load %arg4[%c0_21, %c0_22, %c0_23, %c0_24] : memref<1x2x8x128xf32, #tpu.memory_space<vmem>>, vector<1x2x8x128xf32>
      tpu.vector_store %arg4[%c0_21, %c0_22, %c0_23, %c0_24], %23 {strides = array<i32>} : memref<1x2x8x128xf32, #tpu.memory_space<vmem>>, vector<1x2x8x128xf32>,
    } else {
    }
    %c0 = arith.constant 0 : index
    %c0_1 = arith.constant 0 : index
    %3 = vector.load %arg2[%c0, %c0_1] : memref<8x128xf32, #tpu.memory_space<vmem>>, vector<8x128xf32>
    %c0_2 = arith.constant 0 : index
    %c0_3 = arith.constant 0 : index
    %4 = vector.load %arg3[%c0_2, %c0_3] : memref<8x128xf32, #tpu.memory_space<vmem>>, vector<8x128xf32>
    %5 = arith.subf %3, %4 : vector<8x128xf32>
    %6 = vector.shape_cast %5 : vector<8x128xf32> to vector<1x8x128xf32>
    %7 = arith.mulf %6, %6 : vector<1x8x128xf32>
    %cst = arith.constant dense<0.000000e+00> : vector<8x128xf32>
    %8 = vector.multi_reduction <add>, %7, %cst [0] : vector<1x8x128xf32> to vector<8x128xf32>
    %9 = math.absf %6 : vector<1x8x128xf32>
    %cst_4 = arith.constant dense<0.000000e+00> : vector<8x128xf32>
    %10 = vector.multi_reduction <add>, %9, %cst_4 [0] : vector<1x8x128xf32> to vector<8x128xf32>
    %c0_5 = arith.constant 0 : index
    %c0_6 = arith.constant 0 : index
    %c0_7 = arith.constant 0 : index
    %c0_8 = arith.constant 0 : index
    %11 = vector.load %arg4[%c0_5, %c0_6, %c0_7, %c0_8] : memref<1x2x8x128xf32, #tpu.memory_space<vmem>>, vector<1x1x8x128xf32>
    %12 = vector.shape_cast %11 : vector<1x1x8x128xf32> to vector<8x128xf32>
    %13 = arith.addf %12, %8 : vector<8x128xf32>
    %c0_9 = arith.constant 0 : index
    %c0_10 = arith.constant 0 : index
    %c0_11 = arith.constant 0 : index
    %c0_12 = arith.constant 0 : index
    %14 = vector.load %arg4[%c0_9, %c0_10, %c0_11, %c0_12] : memref<1x2x8x128xf32, #tpu.memory_space<vmem>>, vector<1x1x8x128xf32>
    %15 = vector.shape_cast %14 : vector<1x1x8x128xf32> to vector<8x128xf32>
    %16 = vector.shape_cast %13 : vector<8x128xf32> to vector<1x1x8x128xf32>
    tpu.vector_store %arg4[%c0_9, %c0_10, %c0_11, %c0_12], %16 {strides = array<i32>} : memref<1x2x8x128xf32, #tpu.memory_space<vmem>>, vector<1x1x8x128xf32>,
    %c0_13 = arith.constant 0 : index
    %c1 = arith.constant 1 : index
    %c0_14 = arith.constant 0 : index
    %c0_15 = arith.constant 0 : index
    %17 = vector.load %arg4[%c0_13, %c1, %c0_14, %c0_15] : memref<1x2x8x128xf32, #tpu.memory_space<vmem>>, vector<1x1x8x128xf32>
    %18 = vector.shape_cast %17 : vector<1x1x8x128xf32> to vector<8x128xf32>
    %19 = arith.addf %18, %10 : vector<8x128xf32>
    %c0_16 = arith.constant 0 : index
    %c1_17 = arith.constant 1 : index
    %c0_18 = arith.constant 0 : index
    %c0_19 = arith.constant 0 : index
    %20 = vector.load %arg4[%c0_16, %c1_17, %c0_18, %c0_19] : memref<1x2x8x128xf32, #tpu.memory_space<vmem>>, vector<1x1x8x128xf32>
    %21 = vector.shape_cast %20 : vector<1x1x8x128xf32> to vector<8x128xf32>
    %22 = vector.shape_cast %19 : vector<8x128xf32> to vector<1x1x8x128xf32>
    tpu.vector_store %arg4[%c0_16, %c1_17, %c0_18, %c0_19], %22 {strides = array<i32>} : memref<1x2x8x128xf32, #tpu.memory_space<vmem>>, vector<1x1x8x128xf32>,
    return
  }
  func.func @transform_0(%arg0: i32, %arg1: i32) -> (i32, i32) {
    %c1_i32 = arith.constant 1 : i32
    %0 = arith.muli %arg0, %c1_i32 : i32
    %1 = arith.addi %0, %arg1 : i32
    %c1_i32_0 = arith.constant 1 : i32
    %2 = arith.minsi %1, %c1_i32_0 : i32
    %c0_i32 = arith.constant 0 : i32
    %c0_i32_1 = arith.constant 0 : i32
    return %2, %c0_i32 : i32, i32
  }
  func.func @transform_1(%arg0: i32, %arg1: i32) -> (i32, i32) {
    %c1_i32 = arith.constant 1 : i32
    %0 = arith.muli %arg0, %c1_i32 : i32
    %1 = arith.addi %0, %arg1 : i32
    %c1_i32_0 = arith.constant 1 : i32
    %2 = arith.minsi %1, %c1_i32_0 : i32
    %c0_i32 = arith.constant 0 : i32
    %c0_i32_1 = arith.constant 0 : i32
    return %2, %c0_i32 : i32, i32
  }
  func.func @transform_2(%arg0: i32, %arg1: i32) -> (i32, i32, i32, i32) {
    %c0_i32 = arith.constant 0 : i32
    %c0_i32_0 = arith.constant 0 : i32
    %c0_i32_1 = arith.constant 0 : i32
    %c0_i32_2 = arith.constant 0 : i32
    return %arg0, %c0_i32, %c0_i32_0, %c0_i32_1 : i32, i32, i32, i32
  }
}

</mosaic_0001>

<bundles_post_ra>
// kernel: tpu_custom_call.1
= control target key start
LH: loop header
LB: loop body
LE: loop exit
PB: predicated region body
PF: predicated region fallthrough
CT: control target
= control target key end

     0   :  { %7 = vsyncpa [#allocation3], 0  ;;  %s930_s0 = inlined_call_operand.hbm [shape: f32[16,128], index: 0, kind: input, shape index: {}]   ;;  %s931_s1 = inlined_call_operand.hbm [shape: f32[16,128], index: 1, kind: input, shape index: {}]   ;;  %s932_s2 = inlined_call_operand.hbm [shape: f32[2,2,8,128], index: 2, kind: output, shape index: {}]  }
   0x1   :  { %9 = vsyncpa [#allocation3 + $0x1], 0 }
   0x2   :  { %10 = vsyncpa [#allocation6], 0 }
   0x3   :  { %12 = vsyncpa [#allocation6 + $0x1], 0 }
   0x4   :  { %13 = vsyncpa [#allocation4], 0 }
   0x5   :  { %15 = vsyncpa [#allocation4 + $0x1], 0  ;;  %s676_s9 = smov 0   ;;  %s678_s10 = smov 0  }
   0x6   :  { %s680_s11 = smov 0   ;;  %s682_s12 = smov 0  }
   0x7   :  { %s684_s13 = smov 0   ;;  %s686_s14 = smov 0  }
   0x8   :  { %s688_s15 = smov 0   ;;  %s690_s16 = smov 0  }
   0x9   :  { %s692_s17 = smov 0  }
   0xa LB: > { %s370_s18 = sadd.s32 4294967295, %s654_s17   ;;  %s371_s19 = sadd.s32 4294967294, %s654_s17   ;;  %s654_s17 = sphi %s692_s17, %s21_s17   ;;  %s650_s16 = sphi %s690_s16, %s957_s16   ;;  %s646_s15 = sphi %s688_s15, %s956_s15   ;;  %s642_s14 = sphi %s686_s14, %s955_s14   ;;  %s638_s13 = sphi %s684_s13, %s954_s13   ;;  %s634_s12 = sphi %s682_s12, %s953_s12   ;;  %s630_s11 = sphi %s680_s11, %s952_s11   ;;  %s626_s10 = sphi %s678_s10, %s951_s10   ;;  %s622_s9 = sphi %s676_s9, %s950_s9  }
   0xb   : > { %s33_s20 = sadd.s32 1, %s650_s16  ;;  %p38_p0 = scmp.lt.s32.totalorder %s650_s16, 1 }
   0xc   : > { %p35_p1 = scmp.ge.s32.totalorder %s33_s20, 2  ;;  %s46_s21 = sadd.s32 1, %s642_s14 }
   0xd   : > { %s725_s22 = scalar_select %p38_p0, %s650_s16, 1 }
   0xe   : > { %s959_s20 = smov (%p35_p1, %s33_s20), 0  ;;  %p53_p2 = scmp.ne.s32.totalorder %s642_s14, %s638_s13 }
   0xf   : > { %p54_p3 = scmp.eq.s32.totalorder %s654_s17, 0  ;;  %p41_p4 = scmp.lt.s32.totalorder %s959_s20, 1 }
  0x10   : > { %p59_p5 = scmp.ne.s32.totalorder %s638_s13, %s634_s12  ;;  %p60_p7 = scmp.eq.s32.totalorder %s370_s18, 0 }
  0x11   : > { %p734_p6 = por %p54_p3, %p53_p2  ;;  %s101_s26 = ssub.s32 %s650_s16, %s959_s20 }
  0x12   : > { %s42_s24 = scalar_select %p41_p4, %s959_s20, 1 }
  0x13   : > { %p739_p8 = por %p60_p7, %p59_p5  ;;  %p102_p9 = scmp.eq.s32.totalorder %s101_s26, 0 }
  0x14   : > { %s43_s27 = ssub.s32 %s725_s22, %s42_s24  ;;  %s104_s28 = sadd.s32 1, %s630_s11 }
  0x15   : > { %s937_s25 = scalar_select %p739_p8, 1, 0 }
  0x16   : > { %p44_p10 = scmp.eq.s32.totalorder %s43_s27, 0  ;;  %p114_p11 = scmp.ne.s32.totalorder %s630_s11, %s626_s10 }
  0x17   : > { %s748_s29 = scalar_select %p102_p9, %s630_s11, %s104_s28  }
  0x18   : > { %s751_s30 = scalar_select %p44_p10, %s642_s14, %s46_s21  }
  0x19   : > { %p115_p12 = scmp.eq.s32.totalorder %s370_s18, 1  ;;  %p120_p13 = scmp.ne.s32.totalorder %s626_s10, %s622_s9 }
  0x1a   : > { %p121_p0 = scmp.eq.s32.totalorder %s371_s19, 1  ;;  %p407_p4 = scmp.lt.s32.totalorder %s654_s17, 2 }
  0x1b   : > { %p757_p1 = por %p115_p12, %p114_p11  ;;  %s768_s5 = sand.u32 1, %s642_s14  }
  0x1c   : > { %p762_p3 = por %p121_p0, %p120_p13  ;;  %s375_s6 = sshll.u32 %s725_s22, 7 }
  0x1d   : > { %s938_s3 = scalar_select %p757_p1, 1, 0 }
  0x1e   : > { %s939_s4 = scalar_select %p762_p3, 1, 0 }
  0x1f   : > { %s933_s7 = sshll.u32 %s768_s5, 3  ;;  %s777_s18 = scalar_lea.hbm %s930_s0, %s375_s6 }
  0x20   : > { %s145_s19 = scalar_lea.vmem [#allocation2], %s933_s7  ;;  %p783_p5 = pnand %p407_p4, %p734_p6 }
  0x21   : > { %s155_s21 = sshll.u32 %s145_s19, 4  ;;  %s142_s26 = scalar_lea.sflag [#allocation3], %s768_s5  ;;  %s787_s21 = int_to_ptr.vmem [resolvable:$true] %s155_s21 }
  0x22   : > { %s484_s27 = scalar_lea.hbm %s777_s18, 128  ;;  %p486_p11 = pneg %p783_p5 }
  0x23   : > { %p485_p10 = scmp.ne.s32.totalorder %s777_s18, %s484_s27  ;;  %s489_s8 = scalar_lea.hbm %s930_s0, 256 }
  0x24   : > { %p490_p6 = scmp.lt.u32.totalorder %s777_s18, %s930_s0  ;;  %p491_p0 = scmp.lt.u32.totalorder %s489_s8, %s484_s27 }
  0x25   : > { %p487_p12 = pnand %p486_p11, %p485_p10  ;;  %p493_p2 = scmp.lt.u32.totalorder %s484_s27, %s777_s18 }
  0x26   : > { %p492_p4 = por %p491_p0, %p490_p6 }
  0x27   : > { %p488_p13 = pneg %p487_p12 }
  0x28   : > { %p494_p7 = por %p493_p2, %p492_p4 }
  0x2a   : > { %p495_p9 = pnand %p494_p7, %p488_p13 }
  0x2c   : > { %498 = shalt.err (!%p495_p9)
}
  0x2d   : > { %s499_s7 = scalar_lea.vmem %s787_s21, 128  ;;  %s656_s23 = smov [#allocation2]  }
  0x2e   : > { %p500_p10 = scmp.ne.s32.totalorder %s787_s21, %s499_s7  ;;  %s504_s28 = sshll.u32 %s656_s23, 4  ;;  %s505_s28 = int_to_ptr.vmem [resolvable:$false] %s504_s28 }
  0x2f   : > { %s506_s12 = scalar_lea.vmem %s505_s28, 256  ;;  %p507_p1 = scmp.lt.s32.totalorder %s787_s21, %s505_s28 }
  0x30   : > { %p502_p12 = pnand %p500_p10, %p486_p11  ;;  %p508_p6 = scmp.lt.s32.totalorder %s506_s12, %s499_s7 }
  0x32   : > { %p503_p3 = pneg %p502_p12  ;;  %p509_p0 = por %p508_p6, %p507_p1 }
  0x34   : > { %p510_p2 = pnand %p509_p0, %p503_p3 }
  0x36   : > { %513 = shalt.err (!%p510_p2)
}
  0x37   : > { %399 = dma.hbm_to_vmem [thread:$0]  (!%p783_p5), %s777_s18, 128, %s787_s21, %s142_s26  }
  0x38   : > { %p941_p7 = scmp.lt.s32.totalorder %s654_s17, 3  ;;  %p942_p9 = scmp.ge.s32.totalorder %s654_s17, 1 }
  0x39   : > { %s830_s19 = scalar_lea.hbm %s931_s1, %s375_s6  ;;  %s944_s23 = sshll.u32 %s768_s5, 3 }
  0x3a   : > { %p821_p13 = pnand %p942_p9, %p941_p7  ;;  %s166_s28 = scalar_lea.vmem [#allocation5], %s944_s23 }
  0x3b   : > { %s176_s12 = sshll.u32 %s166_s28, 4  ;;  %s163_s18 = scalar_lea.sflag [#allocation6], %s768_s5  ;;  %s177_s12 = int_to_ptr.vmem [resolvable:$true] %s176_s12 }
  0x3c   : > { %s943_s27 = scalar_select %p821_p13, 1, 0 }
  0x3d   : > { %s514_s21 = scalar_lea.hbm %s830_s19, 128  ;;  %s519_s6 = scalar_lea.hbm %s931_s1, 256 }
  0x3e   : > { %p515_p1 = scmp.ne.s32.totalorder %s830_s19, %s514_s21  ;;  %p520_p10 = scmp.lt.u32.totalorder %s830_s19, %s931_s1 }
  0x3f   : > { %p521_p12 = scmp.lt.u32.totalorder %s519_s6, %s514_s21  ;;  %p523_p0 = scmp.lt.u32.totalorder %s514_s21, %s830_s19 }
  0x40   : > { %p517_p3 = pnand %p515_p1, %p486_p11 }
  0x41   : > { %p522_p6 = por %p521_p12, %p520_p10 }
  0x42   : > { %p518_p4 = pneg %p517_p3 }
  0x43   : > { %p524_p2 = por %p523_p0, %p522_p6 }
  0x45   : > { %p525_p7 = pnand %p524_p2, %p518_p4 }
  0x47   : > { %528 = shalt.err (!%p525_p7)
}
  0x48   : > { %s529_s5 = scalar_lea.vmem %s177_s12, 128  ;;  %s657_s23 = smov [#allocation5]  }
  0x49   : > { %p530_p9 = scmp.ne.s32.totalorder %s177_s12, %s529_s5  ;;  %s534_s28 = sshll.u32 %s657_s23, 4  ;;  %s535_s28 = int_to_ptr.vmem [resolvable:$false] %s534_s28 }
  0x4a   : > { %s536_s22 = scalar_lea.vmem %s535_s28, 256  ;;  %p537_p8 = scmp.lt.s32.totalorder %s177_s12, %s535_s28 }
  0x4b   : > { %p532_p1 = pnand %p530_p9, %p486_p11  ;;  %p538_p13 = scmp.lt.s32.totalorder %s536_s22, %s529_s5 }
  0x4d   : > { %p533_p3 = pneg %p532_p1  ;;  %p539_p10 = por %p538_p13, %p537_p8 }
  0x4f   : > { %p540_p12 = pnand %p539_p10, %p533_p3 }
  0x51   : > { %543 = shalt.err (!%p540_p12)
}
  0x52   : > { %402 = dma.hbm_to_vmem [thread:$0]  (!%p783_p5), %s830_s19, 128, %s177_s12, %s163_s18  }
  0x53   : > { %p945_p4 = scmp.ne.s32.totalorder %s943_s27, 0 }
  0x54   : > { %s187_s21 = sand.u32 (!%p945_p4), 1, %s638_s13   ;;  %p946_p11 = scmp.ne.s32.totalorder (!%p945_p4), %s937_s25, 0 }
  0x55   : > { %185 = sbr.rel (%p945_p4) target bundleno = 122 (0x7a), region = 28  ;;  %s379_s26 = sshll.u32 (!%p945_p4), %s187_s21, 3 }
  0x56   : > { %s188_s6 = scalar_lea.sflag (!%p945_p4), [#allocation3], %s187_s21  ;;  %s191_s7 = scalar_lea.vmem (!%p945_p4), [#allocation2], %s379_s26 }
  0x5c   : > { %609 = dma.done.wait (%p946_p11), %s188_s6, 128  }
  0x5d   : > { %611 = vsyncadd (%p946_p11), %s188_s6, 4294967168  ;;  %s197_s8 = scalar_lea.sflag [#allocation6], %s187_s21  ;;  %s200_s5 = scalar_lea.vmem [#allocation5], %s379_s26 }
  0x5e   : > { %613 = dma.done.wait (%p946_p11), %s197_s8, 128  }
  0x5f   : > { %615 = vsyncadd (%p946_p11), %s197_s8, 4294967168  ;;  %s223_s24 = sand.u32 1, %s626_s10   ;;  %v238_v0 = vld [vmem:[%s191_s7] sm:$0xff]  ;;  %v239_v1 = vld [vmem:[%s200_s5] sm:$0xff]  ;;  %s389_s19 = sshll.u32 %s646_s15, 8 }
  0x60   : > { %s381_s27 = sshll.u32 %s223_s24, 4  ;;  %v240_v2 = vsub.f32 %v238_v0, %v239_v1  ;;  %s870_s22 = scalar_lea.hbm %s932_s2, %s389_s19 }
  0x61   : > { %s225_s12 = scalar_lea.vmem [#allocation7], %s381_s27  ;;  %s874_s25 = scalar_lea.sflag [#allocation4], %s223_s24 }
  0x62   : > { %s266_s18 = sshll.u32 %s225_s12, 4  ;;  %v241_v3 = vmul.f32 %v240_v2, %v240_v2  ;;  %v243_v4 = vand.u32 2147483647, %v240_v2  ;;  %p947_p5 = scmp.ne.s32.totalorder %s938_s3, 0  ;;  %s872_s18 = int_to_ptr.vmem [resolvable:$true] %s266_s18 }
  0x63   : > { %s544_s21 = scalar_lea.vmem %s872_s18, 256  ;;  %s658_s15 = smov [#allocation7]  }
  0x64   : > { %247 = vst [vmem:[%s225_s12] sm:$0xff] %v241_v3  ;;  %383 = vst [vmem:[%s225_s12 + $0x8] sm:$0xff] %v243_v4  ;;  %p545_p8 = scmp.ne.s32.totalorder %s872_s18, %s544_s21  ;;  %s548_s26 = sshll.u32 %s658_s15, 4  ;;  %s549_s26 = int_to_ptr.vmem [resolvable:$false] %s548_s26 }
  0x65   : > { %s550_s6 = scalar_lea.vmem %s549_s26, 512  ;;  %p551_p0 = scmp.lt.s32.totalorder %s872_s18, %s549_s26 }
  0x66   : > { %p546_p13 = pnand %p545_p8, %p947_p5  ;;  %p552_p2 = scmp.lt.s32.totalorder %s550_s6, %s544_s21 }
  0x68   : > { %p547_p6 = pneg %p546_p13  ;;  %p553_p7 = por %p552_p2, %p551_p0 }
  0x6a   : > { %p554_p9 = pnand %p553_p7, %p547_p6 }
  0x6c   : > { %557 = shalt.err (!%p554_p9)
}
  0x6d   : > { %s558_s7 = scalar_lea.hbm %s870_s22, 256  ;;  %s562_s24 = scalar_lea.hbm %s932_s2, 512 }
  0x6e   : > { %p559_p1 = scmp.ne.s32.totalorder %s870_s22, %s558_s7  ;;  %p563_p12 = scmp.lt.u32.totalorder %s870_s22, %s932_s2 }
  0x6f   : > { %p564_p4 = scmp.lt.u32.totalorder %s562_s24, %s558_s7  ;;  %p566_p8 = scmp.lt.u32.totalorder %s558_s7, %s870_s22 }
  0x70   : > { %p560_p3 = pnand %p559_p1, %p947_p5 }
  0x71   : > { %p565_p11 = por %p564_p4, %p563_p12 }
  0x72   : > { %p561_p10 = pneg %p560_p3 }
  0x73   : > { %p567_p13 = por %p566_p8, %p565_p11 }
  0x75   : > { %p568_p6 = pnand %p567_p13, %p561_p10 }
  0x77   : > { %571 = shalt.err (!%p568_p6)
}
  0x78   : > { %s659_s12 = smov 128   ;;  %s660_s23 = smov 8  }
  0x79   : > { %394 = dma.vmem_to_hbm [thread:$0]  (%p947_p5), %s872_s18, 256, %s870_s22, %s874_s25, %s659_s12, %s659_s12, %s660_s23  }
  0x7a PF: > { %s281_s28 = sand.u32 1, %s622_s9   ;;  %p948_p0 = scmp.ne.s32.totalorder %s939_s4, 0 }
  0x7b   : > { %p949_p2 = scmp.ge.s32.totalorder %s654_s17, 2  ;;  %s282_s21 = scalar_lea.sflag [#allocation4], %s281_s28 }
  0x7d   : > { %p404_p7 = pnand %p949_p2, %p948_p0 }
  0x7f   : > { %617 = dma.done.wait (!%p404_p7), %s282_s21, 256  }
  0x80   : > { %619 = vsyncadd (!%p404_p7), %s282_s21, 4294967040  ;;  %s21_s17 = sadd.s32 1, %s654_s17   ;;  %s950_s9 = smov %s626_s10 }
  0x81   : > { %p18_p9 = scmp.ge.s32.totalorder %s21_s17, 4   ;;  %s951_s10 = smov %s630_s11 }
  0x82   : > { %s952_s11 = smov %s748_s29  ;;  %s953_s12 = smov %s638_s13 }
  0x83   : > { %s954_s13 = smov %s642_s14  ;;  %s955_s14 = smov %s751_s30 }
  0x84   : > { %s956_s15 = smov %s650_s16  ;;  %s957_s16 = smov %s959_s20 }
  0x85   :  { %20 = sbr.rel (!%p18_p9) target bundleno = 10 (0xa), region = 91 }
  0x8c   :  { %287 = vsyncpa [#allocation3], 1 }
  0x8d   :  { %289 = vsyncpa [#allocation3 + $0x1], 1 }
  0x8e   :  { %290 = vsyncpa [#allocation6], 1 }
  0x8f   :  { %292 = vsyncpa [#allocation6 + $0x1], 1 }
  0x90   :  { %293 = vsyncpa [#allocation4], 1 }
  0x91   :  { %295 = vsyncpa [#allocation4 + $0x1], 1 }

</bundles_post_ra>
